<compile_context>
chip_gen: v7x
topology: tpu7x:2x2x1
jax: 0.10.0
libtpu: 0.0.40
codegen_flags: <defaults>
</compile_context>

<pallas_src>
import jax
import jax.numpy as jnp
from jax.experimental import pallas as pl
from jax.experimental.pallas import tpu as pltpu


def _round_up(n: int, m: int) -> int:
    return ((n + m - 1) // m) * m


def classifier_kernel(x_ref, w1_ref, b1_ref, w2_ref, b2_ref, o_ref):
    # fc1 on the MXU: bf16 inputs, f32 accumulation.
    h = jnp.dot(x_ref[...], w1_ref[...], preferred_element_type=jnp.float32)
    # Bias + ReLU epilogue in f32 (VPU).
    h = jnp.maximum(h + b1_ref[...], 0.0)
    # fc2 on the MXU: cast activations back to bf16 for the matmul, accumulate f32.
    y = jnp.dot(h.astype(jnp.bfloat16), w2_ref[...],
                preferred_element_type=jnp.float32)
    y = y + b2_ref[...]
    o_ref[...] = y.astype(o_ref.dtype)


def classifier_forward(x, w1, b1, w2, b2, *, block_b=256):
    """x: (B, D) f32; w1: (D, H); b1: (H,); w2: (H, C); b2: (C,). Returns (B, C) f32."""
    B, D = x.shape
    H = w1.shape[1]
    C = w2.shape[1]

    # ---- lane-dense output: pad num_classes up to a multiple of 128 ----
    Cp = _round_up(max(C, 128), 128)
    w2p = jnp.zeros((H, Cp), dtype=w2.dtype).at[:, :C].set(w2)
    b2p = jnp.zeros((1, Cp), dtype=jnp.float32).at[0, :C].set(b2.astype(jnp.float32))
    b1_2d = b1.astype(jnp.float32).reshape(1, H)

    # ---- bf16 inputs for the MXU (accumulation stays f32 in-kernel) ----
    xb = x.astype(jnp.bfloat16)
    w1b = w1.astype(jnp.bfloat16)
    w2b = w2p.astype(jnp.bfloat16)

    # ---- batch tiling: TB rows per grid step, batch padded to a multiple ----
    TB = min(block_b, _round_up(B, 8))          # small batches -> one tile
    Bp = _round_up(B, TB)
    if Bp != B:
        xb = jnp.pad(xb, ((0, Bp - B), (0, 0)))

    grid = (Bp // TB,)

    out = pl.pallas_call(
        classifier_kernel,
        out_shape=jax.ShapeDtypeStruct((Bp, Cp), jnp.float32),
        grid=grid,
        in_specs=[
            pl.BlockSpec((TB, D), lambda i: (i, 0)),   # x: streamed per batch tile
            pl.BlockSpec((D, H), lambda i: (0, 0)),    # w1: VMEM-resident
            pl.BlockSpec((1, H), lambda i: (0, 0)),    # b1: VMEM-resident
            pl.BlockSpec((H, Cp), lambda i: (0, 0)),   # w2 (padded): VMEM-resident
            pl.BlockSpec((1, Cp), lambda i: (0, 0)),   # b2 (padded): VMEM-resident
        ],
        out_specs=pl.BlockSpec((TB, Cp), lambda i: (i, 0)),
        compiler_params=pltpu.CompilerParams(
            # Independent batch tiles -> shard across TensorCores (v7x megacore).
            dimension_semantics=("parallel",),
            # NOTE: per-step VMEM here is tiny (~0.3 MiB at TB=256, D=32). If
            # input_dim grows large, set vmem_limit_bytes explicitly and re-derive
            # TB against v7x's 64 MiB physical VMEM.
        ),
    )(xb, w1b, b1_2d, w2b, b2p)

    # Drop batch padding and the class-dim padding.
    return out[:B, :C]


def reference_forward_bf16(x, w1, b1, w2, b2):
    """Reference emulating the kernel's bf16-input / f32-accumulate numerics."""
    xb = x.astype(jnp.bfloat16).astype(jnp.float32)
    w1b = w1.astype(jnp.bfloat16).astype(jnp.float32)
    w2b = w2.astype(jnp.bfloat16).astype(jnp.float32)
    h = jnp.maximum(xb @ w1b + b1, 0.0)
    h = h.astype(jnp.bfloat16).astype(jnp.float32)
    return h @ w2b + b2


if __name__ == "__main__":
    # Shapes consistent with the module: hidden=64 fixed, input_dim=32,
    # num_classes=10. Batch=384 exercises both the tiling (grid=2 at TB=256)
    # and the batch-padding path.
    B, D, H, C = 384, 32, 64, 10

    key = jax.random.PRNGKey(0)
    kx, kw1, kb1, kw2, kb2 = jax.random.split(key, 5)

    x = jax.random.normal(kx, (B, D), dtype=jnp.float32)
    # Deterministic synthetic "init" of the Linear params (not a checkpoint load).
    w1 = jax.random.normal(kw1, (D, H), dtype=jnp.float32) * (1.0 / jnp.sqrt(D))
    b1 = jax.random.normal(kb1, (H,), dtype=jnp.float32) * 0.01
    w2 = jax.random.normal(kw2, (H, C), dtype=jnp.float32) * (1.0 / jnp.sqrt(H))
    b2 = jax.random.normal(kb2, (C,), dtype=jnp.float32) * 0.01

    out = classifier_forward(x, w1, b1, w2, b2)
    out = jax.block_until_ready(out)

    ref = reference_forward_bf16(x, w1, b1, w2, b2)
    assert out.shape == (B, C)
    assert jnp.allclose(out, ref, atol=2e-3, rtol=2e-3), (
        float(jnp.max(jnp.abs(out - ref))))

    print("KERNEL_OK")
</pallas_src>

<mosaic_0001>
module attributes {stable_mosaic.version = 11 : i64} {
  func.func @classifier_kernel(%arg0: i32, %arg1: memref<256x32xbf16, #tpu.memory_space<vmem>>, %arg2: memref<32x64xbf16, #tpu.memory_space<vmem>>, %arg3: memref<1x64xf32, #tpu.memory_space<vmem>>, %arg4: memref<64x128xbf16, #tpu.memory_space<vmem>>, %arg5: memref<1x128xf32, #tpu.memory_space<vmem>>, %arg6: memref<256x128xf32, #tpu.memory_space<vmem>>) attributes {dimension_semantics = [#tpu.dimension_semantics<parallel>], iteration_bounds = array<i64: 2>, scalar_prefetch = 0 : i64, scratch_operands = 0 : i64, tpu.core_type = #tpu.core_type<tc>, window_params = [{transform_indices = @transform_0, window_bounds = array<i64: 256, 32>}, {pipeline_mode = #tpu.pipeline_mode<synchronous>, transform_indices = @transform_1, window_bounds = array<i64: 32, 64>}, {pipeline_mode = #tpu.pipeline_mode<synchronous>, transform_indices = @transform_2, window_bounds = array<i64: 1, 64>}, {pipeline_mode = #tpu.pipeline_mode<synchronous>, transform_indices = @transform_3, window_bounds = array<i64: 64, 128>}, {pipeline_mode = #tpu.pipeline_mode<synchronous>, transform_indices = @transform_4, window_bounds = array<i64: 1, 128>}, {transform_indices = @transform_5, window_bounds = array<i64: 256, 128>}]} {
    %c0 = arith.constant 0 : index
    %c0_0 = arith.constant 0 : index
    %0 = vector.load %arg1[%c0, %c0_0] : memref<256x32xbf16, #tpu.memory_space<vmem>>, vector<256x32xbf16>
    %c0_1 = arith.constant 0 : index
    %c0_2 = arith.constant 0 : index
    %1 = vector.load %arg2[%c0_1, %c0_2] : memref<32x64xbf16, #tpu.memory_space<vmem>>, vector<32x64xbf16>
    %cst = arith.constant dense<0.000000e+00> : vector<256x64xf32>
    %2 = tpu.matmul %0, %1, %cst {dimension_numbers = #tpu.dot_dimension_numbers<[1], [0], [0], [1], [0, 0, 1, 1], [], []>} : vector<256x32xbf16>, vector<32x64xbf16>, vector<256x64xf32> -> vector<256x64xf32>
    %c0_3 = arith.constant 0 : index
    %c0_4 = arith.constant 0 : index
    %3 = vector.load %arg3[%c0_3, %c0_4] : memref<1x64xf32, #tpu.memory_space<vmem>>, vector<1x64xf32>
    %4 = vector.broadcast %3 : vector<1x64xf32> to vector<256x64xf32>
    %5 = arith.addf %2, %4 : vector<256x64xf32>
    %cst_5 = arith.constant 0.000000e+00 : f32
    %6 = vector.broadcast %cst_5 : f32 to vector<256x64xf32>
    %7 = arith.maximumf %5, %6 : vector<256x64xf32>
    %8 = arith.truncf %7 : vector<256x64xf32> to vector<256x64xbf16>
    %c0_6 = arith.constant 0 : index
    %c0_7 = arith.constant 0 : index
    %9 = vector.load %arg4[%c0_6, %c0_7] : memref<64x128xbf16, #tpu.memory_space<vmem>>, vector<64x128xbf16>
    %cst_8 = arith.constant dense<0.000000e+00> : vector<256x128xf32>
    %10 = tpu.matmul %8, %9, %cst_8 {dimension_numbers = #tpu.dot_dimension_numbers<[1], [0], [0], [1], [0, 0, 1, 1], [], []>} : vector<256x64xbf16>, vector<64x128xbf16>, vector<256x128xf32> -> vector<256x128xf32>
    %c0_9 = arith.constant 0 : index
    %c0_10 = arith.constant 0 : index
    %11 = vector.load %arg5[%c0_9, %c0_10] : memref<1x128xf32, #tpu.memory_space<vmem>>, vector<1x128xf32>
    %12 = vector.broadcast %11 : vector<1x128xf32> to vector<256x128xf32>
    %13 = arith.addf %10, %12 : vector<256x128xf32>
    %c0_11 = arith.constant 0 : index
    %c0_12 = arith.constant 0 : index
    %14 = vector.load %arg6[%c0_11, %c0_12] : memref<256x128xf32, #tpu.memory_space<vmem>>, vector<256x128xf32>
    tpu.vector_store %arg6[%c0_11, %c0_12], %13 {strides = array<i32>} : memref<256x128xf32, #tpu.memory_space<vmem>>, vector<256x128xf32>,
    return
  }
  func.func @transform_0(%arg0: i32) -> (i32, i32) {
    %c0_i32 = arith.constant 0 : i32
    %c0_i32_0 = arith.constant 0 : i32
    return %arg0, %c0_i32 : i32, i32
  }
  func.func @transform_1(%arg0: i32) -> (i32, i32) {
    %c0_i32 = arith.constant 0 : i32
    %c0_i32_0 = arith.constant 0 : i32
    %c0_i32_1 = arith.constant 0 : i32
    return %c0_i32, %c0_i32_0 : i32, i32
  }
  func.func @transform_2(%arg0: i32) -> (i32, i32) {
    %c0_i32 = arith.constant 0 : i32
    %c0_i32_0 = arith.constant 0 : i32
    %c0_i32_1 = arith.constant 0 : i32
    return %c0_i32, %c0_i32_0 : i32, i32
  }
  func.func @transform_3(%arg0: i32) -> (i32, i32) {
    %c0_i32 = arith.constant 0 : i32
    %c0_i32_0 = arith.constant 0 : i32
    %c0_i32_1 = arith.constant 0 : i32
    return %c0_i32, %c0_i32_0 : i32, i32
  }
  func.func @transform_4(%arg0: i32) -> (i32, i32) {
    %c0_i32 = arith.constant 0 : i32
    %c0_i32_0 = arith.constant 0 : i32
    %c0_i32_1 = arith.constant 0 : i32
    return %c0_i32, %c0_i32_0 : i32, i32
  }
  func.func @transform_5(%arg0: i32) -> (i32, i32) {
    %c0_i32 = arith.constant 0 : i32
    %c0_i32_0 = arith.constant 0 : i32
    return %arg0, %c0_i32 : i32, i32
  }
}

</mosaic_0001>

<bundles_post_ra>
// kernel: tpu_custom_call.1
= control target key start
LH: loop header
LB: loop body
LE: loop exit
PB: predicated region body
PF: predicated region fallthrough
CT: control target
= control target key end

     0   :  { %10 = vsyncpa [#allocation3], 0  ;;  %s1603_s0 = inlined_call_operand.vmem [shape: bf16[512,32], index: 0, kind: input, shape index: {}]   ;;  %s1604_s1 = inlined_call_operand.vmem [shape: bf16[32,64], index: 1, kind: input, shape index: {}]   ;;  %s1605_s2 = inlined_call_operand.vmem [shape: f32[1,64], index: 2, kind: input, shape index: {}]   ;;  %s1606_s3 = inlined_call_operand.vmem [shape: bf16[64,128], index: 3, kind: input, shape index: {}]   ;;  %s1607_s4 = inlined_call_operand.vmem [shape: f32[1,128], index: 4, kind: input, shape index: {}]   ;;  %s1608_s5 = inlined_call_operand.hbm [shape: f32[512,128], index: 5, kind: output, shape index: {}]  }
   0x1   :  { %12 = vsyncpa [#allocation3 + $0x1], 0  ;;  %s1320_s18 = smov 0   ;;  %s1322_s19 = smov 0  }
   0x2   :  { %s1324_s20 = smov 0   ;;  %s1326_s21 = smov 0  }
   0x3 LB: > { %s1341_s22 = sadd.s32 4294967295, %s1285_s21   ;;  %s977_s23 = sadd.s32 4294967294, %s1285_s21   ;;  %s1285_s21 = sphi %s1326_s21, %s1614_s21   ;;  %s1281_s20 = sphi %s1324_s20, %s1613_s20   ;;  %s1277_s19 = sphi %s1322_s19, %s1612_s19   ;;  %s1273_s18 = sphi %s1320_s18, %s1611_s18  }
   0x4   : > { %s1345_s24 = sadd.s32 1, %s1285_s21   ;;  %s135_s25 = sadd.s32 1, %s1281_s20 }
   0x5   : > { %s132_s26 = ssub.s32 %s1285_s21, %s1345_s24  ;;  %p145_p0 = scmp.ne.s32.totalorder %s1281_s20, %s1277_s19 }
   0x6   : > { %p133_p1 = scmp.eq.s32.totalorder %s132_s26, 0  ;;  %p146_p2 = scmp.eq.s32.totalorder %s1341_s22, 1 }
   0x7   : > { %p151_p3 = scmp.ne.s32.totalorder %s1277_s19, %s1273_s18  ;;  %p152_p4 = scmp.eq.s32.totalorder %s977_s23, 1 }
   0x8   : > { %s1356_s27 = scalar_select %p133_p1, %s1281_s20, %s135_s25  }
   0x9   : > { %p1358_p5 = por %p146_p2, %p145_p0  ;;  %p1362_p6 = por %p152_p4, %p151_p3 }
   0xa   : > { %p980_p7 = scmp.ge.s32.totalorder %s1285_s21, 1  ;;  %p191_p8 = scmp.lt.s32.totalorder %s1285_s21, 3 }
   0xc   : > { %p192_p9 = pnand %p980_p7, %p191_p8 }
   0xd   : > { %v1201_v0 = vld [vmem:[%s1604_s1] sm:$0xff] (!%p192_p9)   ;;  %s982_s7 = sshll.u32 (!%p192_p9), %s1341_s22, 5  ;;  %v1202_v1 = vld [vmem:[%s1604_s1 + $0x8] sm:$0xff] (!%p192_p9)   ;;  %vm362_vm0 = vcmask (!%p192_p9), 261120   ;;  %v1221_v20 = vld [vmem:[%s1606_s3 + $0x10] sm:$0xff] (!%p192_p9)   ;;  %vm659_vm1 = vcmask (!%p192_p9), 523264  }
   0xe   : > { %195 = sbr.rel (%p192_p9) target bundleno = 536 (0x218), region = 40  ;;  %p220_p10 = scmp.lt.s32.totalorder (!%p192_p9), %s982_s7, 63  ;;  %1084 = vmatprep.subr.bf16.mxu0 (!%p192_p9), %v1201_v0  ;;  %v1219_v2 = vld [vmem:[%s1606_s3] sm:$0xff] (!%p192_p9)   ;;  %v1220_v3 = vld [vmem:[%s1606_s3 + $0x8] sm:$0xff] (!%p192_p9)   ;;  %v1222_v21 = vld [vmem:[%s1606_s3 + $0x18] sm:$0xff] (!%p192_p9)  }
   0xf   : > { %1085 = vmatpush3.bf16.msra.mxu0 (!%p192_p9), %v1201_v0  ;;  %1120 = vmatprep.subr.bf16.mxu1 (!%p192_p9), %v1219_v2  ;;  %v1427_v22 = vld [vmem:[%s1605_s2] ss:$0 sm:$0xff] (!%p192_p9)  ;;  %s216_s8 = sand.u32 (!%p192_p9), 1, %s1277_s19   ;;  %s1045_s13 = sshll.u32 (!%p192_p9), %s1341_s22, 12 }
  0x10   : > { %1086 = vmatprep.subr.bf16.mxu0 (!%p192_p9), %v1202_v1  ;;  %1121 = vmatpush3.bf16.msra.mxu1 (!%p192_p9), %v1219_v2  ;;  %s981_s9 = sshll.u32 (!%p192_p9), %s216_s8, 8  ;;  %s1562_s22 = scalar_lea.sflag (!%p192_p9), [#allocation3], %s216_s8 }
  0x11   : > { %1122 = vmatprep.subr.bf16.mxu1 (!%p192_p9), %v1220_v3  ;;  %s1487_s12 = scalar_lea.vmem (!%p192_p9), [#allocation2], %s981_s9  ;;  %s1287_s25 = smov (!%p192_p9), [#allocation2]  }
  0x12   : > { %s1227_s26 = sshll.u32 (!%p192_p9), %s1287_s25, 4  ;;  %s1228_s26 = int_to_ptr.vmem [resolvable:$false] %s1227_s26 }
  0x13   : > { %1087 = vmatpush3.bf16.msra.mxu0 (!%p192_p9), %v1202_v1  ;;  %s1229_s30 = scalar_lea.vmem (!%p192_p9), %s1228_s26, 8192 }
  0x14   : > { %1123 = vmatpush3.bf16.msra.mxu1 (!%p192_p9), %v1220_v3 }
  0x15   : > { %s1616_s7 = smov (!%p220_p10, %s982_s7), 63  ;;  %1124 = vmatprep.subr.bf16.mxu1 %v1221_v20 }
  0x16   : > { %s983_s14 = sshll.u32 %s1616_s7, 2 }
  0x17   : > { %s1384_s17 = scalar_lea.vmem %s1603_s0, %s983_s14  ;;  %s915_s14 = sshll.u32 %s1487_s12, 4  ;;  %s1554_s14 = int_to_ptr.vmem [resolvable:$true] %s915_s14 }
  0x18   : > { %v1203_v4 = vld [vmem:[%s1384_s17] sm:$0xff]   ;;  %v1204_v5 = vld [vmem:[%s1384_s17 + $0x8] sm:$0xff]   ;;  %v1205_v6 = vld [vmem:[%s1384_s17 + $0x10] sm:$0xff]   ;;  %1125 = vmatpush3.bf16.msra.mxu1 %v1221_v20  ;;  %s1223_s23 = scalar_lea.vmem %s1554_s14, 4096  ;;  %p1230_p0 = scmp.lt.s32.totalorder %s1554_s14, %s1228_s26 }
  0x19   : > { %1088 = vmatprep.mubr.msk.bf16.mxu0 %vm362_vm0, %v1203_v4  ;;  %v1206_v7 = vld [vmem:[%s1384_s17 + $0x18] sm:$0xff]   ;;  %v1207_v8 = vld [vmem:[%s1384_s17 + $0x20] sm:$0xff]   ;;  %v1208_v9 = vld [vmem:[%s1384_s17 + $0x28] sm:$0xff]   ;;  %1126 = vmatprep.subr.bf16.mxu1 %v1222_v21  ;;  %p1224_p11 = scmp.ne.s32.totalorder %s1554_s14, %s1223_s23  ;;  %p1231_p1 = scmp.lt.s32.totalorder %s1229_s30, %s1223_s23 }
  0x1a   : > { %1089 = vmatmul.mubr.msk.bf16.vlgmr.msra.gmra.mrb[0].mxu0 %vm362_vm0, %v1204_v5  ;;  %v1209_v10 = vld [vmem:[%s1384_s17 + $0x30] sm:$0xff]   ;;  %v1210_v11 = vld [vmem:[%s1384_s17 + $0x38] sm:$0xff]   ;;  %v1211_v12 = vld [vmem:[%s1384_s17 + $0x40] sm:$0xff]  }
  0x1b   : > { %1092 = vmatprep.mubr.msk.bf16.mxu0 %vm362_vm0, %v1205_v6  ;;  %v1212_v13 = vld [vmem:[%s1384_s17 + $0x48] sm:$0xff]   ;;  %v1213_v14 = vld [vmem:[%s1384_s17 + $0x50] sm:$0xff]   ;;  %v1214_v15 = vld [vmem:[%s1384_s17 + $0x58] sm:$0xff]   ;;  %p1225_p12 = pnand %p1224_p11, %p1358_p5  ;;  %p1232_p2 = por %p1231_p1, %p1230_p0 }
  0x1c   : > { %v1215_v16 = vld [vmem:[%s1384_s17 + $0x60] sm:$0xff]   ;;  %v1216_v17 = vld [vmem:[%s1384_s17 + $0x68] sm:$0xff]   ;;  %v1217_v18 = vld [vmem:[%s1384_s17 + $0x70] sm:$0xff]   ;;  %1127 = vmatpush3.bf16.msra.mxu1 %v1222_v21 }
  0x1d   : > { %v1218_v19 = vld [vmem:[%s1384_s17 + $0x78] sm:$0xff]   ;;  %s1552_s17 = scalar_lea.hbm %s1608_s5, %s1045_s13  ;;  %p1226_p13 = pneg %p1225_p12 }
  0x1f   : > { %p1233_p3 = pnand %p1232_p2, %p1226_p13 }
  0x22   : > { %1093 = vmatmul.mubr.msk.bf16.gmra.mrb[4].mxu0 %vm362_vm0, %v1206_v7 }
  0x23   : > { %1096 = vmatprep.mubr.msk.bf16.mxu0 %vm362_vm0, %v1207_v8 }
  0x2a   : > { %1097 = vmatmul.mubr.msk.bf16.gmra.mrb[8].mxu0 %vm362_vm0, %v1208_v9 }
  0x2b   : > { %1100 = vmatprep.mubr.msk.bf16.mxu0 %vm362_vm0, %v1209_v10 }
  0x32   : > { %1101 = vmatmul.mubr.msk.bf16.gmra.mrb[12].mxu0 %vm362_vm0, %v1210_v11 }
  0x33   : > { %1104 = vmatprep.mubr.msk.bf16.mxu0 %vm362_vm0, %v1211_v12 }
  0x3a   : > { %1105 = vmatmul.mubr.msk.bf16.gmra.mrb[16].mxu0 %vm362_vm0, %v1212_v13 }
  0x3b   : > { %1108 = vmatprep.mubr.msk.bf16.mxu0 %vm362_vm0, %v1213_v14 }
  0x42   : > { %1109 = vmatmul.mubr.msk.bf16.gmra.mrb[20].mxu0 %vm362_vm0, %v1214_v15 }
  0x43   : > { %1112 = vmatprep.mubr.msk.bf16.mxu0 %vm362_vm0, %v1215_v16 }
  0x4a   : > { %1113 = vmatmul.mubr.msk.bf16.gmra.mrb[24].mxu0 %vm362_vm0, %v1216_v17 }
  0x4b   : > { %1116 = vmatprep.mubr.msk.bf16.mxu0 %vm362_vm0, %v1217_v18 }
  0x52   : > { %1117 = vmatmul.mubr.msk.bf16.gmra.mrb[28].mxu0 %vm362_vm0, %v1218_v19 }
  0xed   : > { %v1090_v23 = vpop.f32.mrb[0].mxu0 }
  0xee   : > { %v454_v24 = vadd.f32 %v1090_v23, %v1427_v22  ;;  %v445_v25 = vpop.f32.mrb[1].mxu0 }
  0xef   : > { %v446_v26 = vadd.f32 %v1427_v22, %v445_v25  ;;  %v1091_v27 = vpop.f32.mrb[2].mxu0 }
  0xf0   : > { %v457_v28 = vadd.f32 %v1091_v27, %v1427_v22  ;;  %v448_v29 = vpop.f32.mrb[3].mxu0  ;;  %v574_v31 = vmax.f32 %v454_v24, 0.0 }
  0xf1   : > { %v449_v30 = vadd.f32 %v1427_v22, %v448_v29  ;;  %v572_v33 = vmax.f32 %v446_v26, 0.0 }
  0xf2   : > { %v575_v32 = vmax.f32 %v457_v28, 0.0 }
  0xf3   : > { %v573_v34 = vmax.f32 %v449_v30, 0.0 }
  0xf4   : > { %v605_v35 = vpack.c.bf16 %v575_v32, %v574_v31 }
  0xf5   : > { %v1094_v36 = vpop.f32.mrb[4].mxu0  ;;  %v604_v37 = vpack.c.bf16 %v573_v34, %v572_v33 }
  0xf6   : > { %v470_v38 = vadd.f32 %v1094_v36, %v1427_v22  ;;  %v461_v39 = vpop.f32.mrb[5].mxu0 }
  0xf7   : > { %v462_v40 = vadd.f32 %v1427_v22, %v461_v39  ;;  %v1095_v41 = vpop.f32.mrb[6].mxu0  ;;  %1128 = vmatprep.mubr.msk.bf16.mxu1 %vm659_vm1, %v604_v37 }
  0xf8   : > { %v473_v42 = vadd.f32 %v1095_v41, %v1427_v22  ;;  %v464_v43 = vpop.f32.mrb[7].mxu0  ;;  %1129 = vmatmul.mubr.msk.bf16.vlgmr.msra.gmra.mrb[0].mxu1 %vm659_vm1, %v605_v35  ;;  %v578_v45 = vmax.f32 %v470_v38, 0.0 }
  0xf9   : > { %v465_v44 = vadd.f32 %v1427_v22, %v464_v43  ;;  %v576_v47 = vmax.f32 %v462_v40, 0.0 }
  0xfa   : > { %v579_v46 = vmax.f32 %v473_v42, 0.0 }
  0xfb   : > { %v577_v48 = vmax.f32 %v465_v44, 0.0 }
  0xfc   : > { %v607_v49 = vpack.c.bf16 %v579_v46, %v578_v45 }
  0xfd   : > { %v606_v50 = vpack.c.bf16 %v577_v48, %v576_v47  ;;  %v1098_v51 = vpop.f32.mrb[8].mxu0 }
  0xfe   : > { %v486_v52 = vadd.f32 %v1098_v51, %v1427_v22  ;;  %v477_v53 = vpop.f32.mrb[9].mxu0 }
  0xff   : > { %v478_v54 = vadd.f32 %v1427_v22, %v477_v53  ;;  %v1099_v55 = vpop.f32.mrb[10].mxu0  ;;  %1132 = vmatprep.mubr.msk.bf16.mxu1 %vm659_vm1, %v606_v50 }
 0x100   : > { %v489_v56 = vadd.f32 %v1099_v55, %v1427_v22  ;;  %v480_v57 = vpop.f32.mrb[11].mxu0  ;;  %1133 = vmatmul.mubr.msk.bf16.gmra.mrb[4].mxu1 %vm659_vm1, %v607_v49  ;;  %v582_v59 = vmax.f32 %v486_v52, 0.0 }
 0x101   : > { %v481_v58 = vadd.f32 %v1427_v22, %v480_v57  ;;  %v580_v61 = vmax.f32 %v478_v54, 0.0 }
 0x102   : > { %v583_v60 = vmax.f32 %v489_v56, 0.0 }
 0x103   : > { %v581_v62 = vmax.f32 %v481_v58, 0.0 }
 0x104   : > { %v609_v63 = vpack.c.bf16 %v583_v60, %v582_v59 }
 0x105   : > { %v608_v0 = vpack.c.bf16 %v581_v62, %v580_v61  ;;  %v1102_v1 = vpop.f32.mrb[12].mxu0 }
 0x106   : > { %v502_v2 = vadd.f32 %v1102_v1, %v1427_v22  ;;  %v493_v3 = vpop.f32.mrb[13].mxu0 }
 0x107   : > { %v494_v4 = vadd.f32 %v1427_v22, %v493_v3  ;;  %v1103_v5 = vpop.f32.mrb[14].mxu0  ;;  %1136 = vmatprep.mubr.msk.bf16.mxu1 %vm659_vm1, %v608_v0 }
 0x108   : > { %v505_v6 = vadd.f32 %v1103_v5, %v1427_v22  ;;  %v496_v7 = vpop.f32.mrb[15].mxu0  ;;  %1137 = vmatmul.mubr.msk.bf16.gmra.mrb[8].mxu1 %vm659_vm1, %v609_v63  ;;  %v586_v9 = vmax.f32 %v502_v2, 0.0 }
 0x109   : > { %v497_v8 = vadd.f32 %v1427_v22, %v496_v7  ;;  %v584_v11 = vmax.f32 %v494_v4, 0.0 }
 0x10a   : > { %v587_v10 = vmax.f32 %v505_v6, 0.0 }
 0x10b   : > { %v585_v12 = vmax.f32 %v497_v8, 0.0  ;;  %v1483_v8 = vld [vmem:[%s1607_s4] ss:$0 sm:$0xff] }
 0x10c   : > { %v611_v13 = vpack.c.bf16 %v587_v10, %v586_v9 }
 0x10d   : > { %v610_v14 = vpack.c.bf16 %v585_v12, %v584_v11  ;;  %v1106_v15 = vpop.f32.mrb[16].mxu0 }
 0x10e   : > { %v518_v16 = vadd.f32 %v1106_v15, %v1427_v22  ;;  %v509_v17 = vpop.f32.mrb[17].mxu0 }
 0x10f   : > { %v510_v18 = vadd.f32 %v1427_v22, %v509_v17  ;;  %v1107_v19 = vpop.f32.mrb[18].mxu0  ;;  %1140 = vmatprep.mubr.msk.bf16.mxu1 %vm659_vm1, %v610_v14 }
 0x110   : > { %v521_v20 = vadd.f32 %v1107_v19, %v1427_v22  ;;  %v512_v21 = vpop.f32.mrb[19].mxu0  ;;  %1141 = vmatmul.mubr.msk.bf16.gmra.mrb[12].mxu1 %vm659_vm1, %v611_v13  ;;  %v590_v24 = vmax.f32 %v518_v16, 0.0 }
 0x111   : > { %v513_v23 = vadd.f32 %v1427_v22, %v512_v21  ;;  %v588_v26 = vmax.f32 %v510_v18, 0.0 }
 0x112   : > { %v591_v25 = vmax.f32 %v521_v20, 0.0 }
 0x113   : > { %v589_v27 = vmax.f32 %v513_v23, 0.0 }
 0x114   : > { %v613_v28 = vpack.c.bf16 %v591_v25, %v590_v24 }
 0x115   : > { %v612_v29 = vpack.c.bf16 %v589_v27, %v588_v26  ;;  %v1110_v30 = vpop.f32.mrb[20].mxu0 }
 0x116   : > { %v534_v31 = vadd.f32 %v1110_v30, %v1427_v22  ;;  %v525_v32 = vpop.f32.mrb[21].mxu0 }
 0x117   : > { %v526_v33 = vadd.f32 %v1427_v22, %v525_v32  ;;  %v1111_v34 = vpop.f32.mrb[22].mxu0  ;;  %1144 = vmatprep.mubr.msk.bf16.mxu1 %vm659_vm1, %v612_v29 }
 0x118   : > { %v537_v35 = vadd.f32 %v1111_v34, %v1427_v22  ;;  %v528_v36 = vpop.f32.mrb[23].mxu0  ;;  %1145 = vmatmul.mubr.msk.bf16.gmra.mrb[16].mxu1 %vm659_vm1, %v613_v28  ;;  %v594_v38 = vmax.f32 %v534_v31, 0.0 }
 0x119   : > { %v529_v37 = vadd.f32 %v1427_v22, %v528_v36  ;;  %v592_v40 = vmax.f32 %v526_v33, 0.0 }
 0x11a   : > { %v595_v39 = vmax.f32 %v537_v35, 0.0 }
 0x11b   : > { %v593_v41 = vmax.f32 %v529_v37, 0.0 }
 0x11c   : > { %v615_v42 = vpack.c.bf16 %v595_v39, %v594_v38 }
 0x11d   : > { %v614_v43 = vpack.c.bf16 %v593_v41, %v592_v40  ;;  %v1114_v44 = vpop.f32.mrb[24].mxu0 }
 0x11e   : > { %v550_v45 = vadd.f32 %v1114_v44, %v1427_v22  ;;  %v541_v46 = vpop.f32.mrb[25].mxu0 }
 0x11f   : > { %v542_v47 = vadd.f32 %v1427_v22, %v541_v46  ;;  %v1115_v48 = vpop.f32.mrb[26].mxu0  ;;  %1148 = vmatprep.mubr.msk.bf16.mxu1 %vm659_vm1, %v614_v43 }
 0x120   : > { %v553_v49 = vadd.f32 %v1115_v48, %v1427_v22  ;;  %v544_v50 = vpop.f32.mrb[27].mxu0  ;;  %1149 = vmatmul.mubr.msk.bf16.gmra.mrb[20].mxu1 %vm659_vm1, %v615_v42  ;;  %v598_v52 = vmax.f32 %v550_v45, 0.0 }
 0x121   : > { %v545_v51 = vadd.f32 %v1427_v22, %v544_v50  ;;  %v596_v54 = vmax.f32 %v542_v47, 0.0 }
 0x122   : > { %v599_v53 = vmax.f32 %v553_v49, 0.0 }
 0x123   : > { %v597_v55 = vmax.f32 %v545_v51, 0.0 }
 0x124   : > { %v617_v56 = vpack.c.bf16 %v599_v53, %v598_v52 }
 0x125   : > { %v616_v57 = vpack.c.bf16 %v597_v55, %v596_v54  ;;  %v1118_v58 = vpop.f32.mrb[28].mxu0 }
 0x126   : > { %v566_v59 = vadd.f32 %v1118_v58, %v1427_v22  ;;  %v557_v60 = vpop.f32.mrb[29].mxu0 }
 0x127   : > { %v558_v61 = vadd.f32 %v1427_v22, %v557_v60  ;;  %v1119_v62 = vpop.f32.mrb[30].mxu0  ;;  %1152 = vmatprep.mubr.msk.bf16.mxu1 %vm659_vm1, %v616_v57 }
 0x128   : > { %v569_v63 = vadd.f32 %v1119_v62, %v1427_v22  ;;  %v560_v0 = vpop.f32.mrb[31].mxu0  ;;  %1153 = vmatmul.mubr.msk.bf16.gmra.mrb[24].mxu1 %vm659_vm1, %v617_v56  ;;  %v602_v2 = vmax.f32 %v566_v59, 0.0 }
 0x129   : > { %v561_v1 = vadd.f32 %v1427_v22, %v560_v0  ;;  %v600_v4 = vmax.f32 %v558_v61, 0.0 }
 0x12a   : > { %v603_v3 = vmax.f32 %v569_v63, 0.0 }
 0x12b   : > { %v601_v5 = vmax.f32 %v561_v1, 0.0 }
 0x12c   : > { %v619_v6 = vpack.c.bf16 %v603_v3, %v602_v2 }
 0x12d   : > { %v618_v7 = vpack.c.bf16 %v601_v5, %v600_v4 }
 0x12f   : > { %1156 = vmatprep.mubr.msk.bf16.mxu1 %vm659_vm1, %v618_v7 }
 0x130   : > { %1157 = vmatmul.mubr.msk.bf16.gmra.mrb[28].mxu1 %vm659_vm1, %v619_v6 }
 0x1cb   : > { %v1130_v9 = vpop.f32.mrb[0].mxu1 }
 0x1cc   : > { %v751_v22 = vadd.f32 %v1130_v9, %v1483_v8  ;;  %v742_v10 = vpop.f32.mrb[1].mxu1 }
 0x1cd   : > { %v743_v11 = vadd.f32 %v1483_v8, %v742_v10  ;;  %v1131_v12 = vpop.f32.mrb[2].mxu1 }
 0x1ce   : > { %871 = vst [vmem:[%s1487_s12 + $0x10] sm:$0xff] %v751_v22  ;;  %v754_v13 = vadd.f32 %v1131_v12, %v1483_v8  ;;  %v745_v14 = vpop.f32.mrb[3].mxu1 }
 0x1cf   : > { %869 = vst [vmem:[%s1487_s12] sm:$0xff] %v743_v11  ;;  %v746_v15 = vadd.f32 %v1483_v8, %v745_v14 }
 0x1d0   : > { %872 = vst [vmem:[%s1487_s12 + $0x18] sm:$0xff] %v754_v13 }
 0x1d1   : > { %870 = vst [vmem:[%s1487_s12 + $0x8] sm:$0xff] %v746_v15 }
 0x1d3   : > { %v1134_v16 = vpop.f32.mrb[4].mxu1 }
 0x1d4   : > { %v767_v17 = vadd.f32 %v1134_v16, %v1483_v8  ;;  %v758_v18 = vpop.f32.mrb[5].mxu1 }
 0x1d5   : > { %v759_v19 = vadd.f32 %v1483_v8, %v758_v18  ;;  %v1135_v20 = vpop.f32.mrb[6].mxu1 }
 0x1d6   : > { %875 = vst [vmem:[%s1487_s12 + $0x30] sm:$0xff] %v767_v17  ;;  %v770_v21 = vadd.f32 %v1135_v20, %v1483_v8  ;;  %v761_v23 = vpop.f32.mrb[7].mxu1 }
 0x1d7   : > { %873 = vst [vmem:[%s1487_s12 + $0x20] sm:$0xff] %v759_v19  ;;  %v762_v24 = vadd.f32 %v1483_v8, %v761_v23 }
 0x1d8   : > { %876 = vst [vmem:[%s1487_s12 + $0x38] sm:$0xff] %v770_v21 }
 0x1d9   : > { %874 = vst [vmem:[%s1487_s12 + $0x28] sm:$0xff] %v762_v24 }
 0x1db   : > { %v1138_v25 = vpop.f32.mrb[8].mxu1 }
 0x1dc   : > { %v783_v26 = vadd.f32 %v1138_v25, %v1483_v8  ;;  %v774_v27 = vpop.f32.mrb[9].mxu1 }
 0x1dd   : > { %v775_v28 = vadd.f32 %v1483_v8, %v774_v27  ;;  %v1139_v29 = vpop.f32.mrb[10].mxu1 }
 0x1de   : > { %879 = vst [vmem:[%s1487_s12 + $0x50] sm:$0xff] %v783_v26  ;;  %v786_v30 = vadd.f32 %v1139_v29, %v1483_v8  ;;  %v777_v31 = vpop.f32.mrb[11].mxu1 }
 0x1df   : > { %877 = vst [vmem:[%s1487_s12 + $0x40] sm:$0xff] %v775_v28  ;;  %v778_v32 = vadd.f32 %v1483_v8, %v777_v31 }
 0x1e0   : > { %880 = vst [vmem:[%s1487_s12 + $0x58] sm:$0xff] %v786_v30 }
 0x1e1   : > { %878 = vst [vmem:[%s1487_s12 + $0x48] sm:$0xff] %v778_v32 }
 0x1e3   : > { %v1142_v33 = vpop.f32.mrb[12].mxu1 }
 0x1e4   : > { %v799_v34 = vadd.f32 %v1142_v33, %v1483_v8  ;;  %v790_v35 = vpop.f32.mrb[13].mxu1 }
 0x1e5   : > { %v791_v36 = vadd.f32 %v1483_v8, %v790_v35  ;;  %v1143_v37 = vpop.f32.mrb[14].mxu1 }
 0x1e6   : > { %883 = vst [vmem:[%s1487_s12 + $0x70] sm:$0xff] %v799_v34  ;;  %v802_v38 = vadd.f32 %v1143_v37, %v1483_v8  ;;  %v793_v39 = vpop.f32.mrb[15].mxu1 }
 0x1e7   : > { %881 = vst [vmem:[%s1487_s12 + $0x60] sm:$0xff] %v791_v36  ;;  %v794_v40 = vadd.f32 %v1483_v8, %v793_v39 }
 0x1e8   : > { %884 = vst [vmem:[%s1487_s12 + $0x78] sm:$0xff] %v802_v38 }
 0x1e9   : > { %882 = vst [vmem:[%s1487_s12 + $0x68] sm:$0xff] %v794_v40 }
 0x1eb   : > { %v1146_v41 = vpop.f32.mrb[16].mxu1 }
 0x1ec   : > { %v815_v42 = vadd.f32 %v1146_v41, %v1483_v8  ;;  %v806_v43 = vpop.f32.mrb[17].mxu1 }
 0x1ed   : > { %v807_v44 = vadd.f32 %v1483_v8, %v806_v43  ;;  %v1147_v45 = vpop.f32.mrb[18].mxu1 }
 0x1ee   : > { %887 = vst [vmem:[%s1487_s12 + $0x90] sm:$0xff] %v815_v42  ;;  %v818_v46 = vadd.f32 %v1147_v45, %v1483_v8  ;;  %v809_v47 = vpop.f32.mrb[19].mxu1 }
 0x1ef   : > { %885 = vst [vmem:[%s1487_s12 + $0x80] sm:$0xff] %v807_v44  ;;  %v810_v48 = vadd.f32 %v1483_v8, %v809_v47 }
 0x1f0   : > { %888 = vst [vmem:[%s1487_s12 + $0x98] sm:$0xff] %v818_v46 }
 0x1f1   : > { %886 = vst [vmem:[%s1487_s12 + $0x88] sm:$0xff] %v810_v48 }
 0x1f3   : > { %v1150_v49 = vpop.f32.mrb[20].mxu1 }
 0x1f4   : > { %v831_v50 = vadd.f32 %v1150_v49, %v1483_v8  ;;  %v822_v51 = vpop.f32.mrb[21].mxu1 }
 0x1f5   : > { %v823_v52 = vadd.f32 %v1483_v8, %v822_v51  ;;  %v1151_v53 = vpop.f32.mrb[22].mxu1 }
 0x1f6   : > { %891 = vst [vmem:[%s1487_s12 + $0xb0] sm:$0xff] %v831_v50  ;;  %v834_v54 = vadd.f32 %v1151_v53, %v1483_v8  ;;  %v825_v55 = vpop.f32.mrb[23].mxu1 }
 0x1f7   : > { %889 = vst [vmem:[%s1487_s12 + $0xa0] sm:$0xff] %v823_v52  ;;  %v826_v56 = vadd.f32 %v1483_v8, %v825_v55 }
 0x1f8   : > { %892 = vst [vmem:[%s1487_s12 + $0xb8] sm:$0xff] %v834_v54 }
 0x1f9   : > { %890 = vst [vmem:[%s1487_s12 + $0xa8] sm:$0xff] %v826_v56 }
 0x1fb   : > { %v1154_v57 = vpop.f32.mrb[24].mxu1 }
 0x1fc   : > { %v847_v58 = vadd.f32 %v1154_v57, %v1483_v8  ;;  %v838_v59 = vpop.f32.mrb[25].mxu1 }
 0x1fd   : > { %v839_v60 = vadd.f32 %v1483_v8, %v838_v59  ;;  %v1155_v61 = vpop.f32.mrb[26].mxu1 }
 0x1fe   : > { %895 = vst [vmem:[%s1487_s12 + $0xd0] sm:$0xff] %v847_v58  ;;  %v850_v62 = vadd.f32 %v1155_v61, %v1483_v8  ;;  %v841_v63 = vpop.f32.mrb[27].mxu1 }
 0x1ff   : > { %893 = vst [vmem:[%s1487_s12 + $0xc0] sm:$0xff] %v839_v60  ;;  %v842_v0 = vadd.f32 %v1483_v8, %v841_v63 }
 0x200   : > { %896 = vst [vmem:[%s1487_s12 + $0xd8] sm:$0xff] %v850_v62 }
 0x201   : > { %894 = vst [vmem:[%s1487_s12 + $0xc8] sm:$0xff] %v842_v0 }
 0x203   : > { %v1158_v1 = vpop.f32.mrb[28].mxu1 }
 0x204   : > { %v863_v2 = vadd.f32 %v1158_v1, %v1483_v8  ;;  %v854_v3 = vpop.f32.mrb[29].mxu1 }
 0x205   : > { %v855_v4 = vadd.f32 %v1483_v8, %v854_v3  ;;  %v1159_v5 = vpop.f32.mrb[30].mxu1 }
 0x206   : > { %899 = vst [vmem:[%s1487_s12 + $0xf0] sm:$0xff] %v863_v2  ;;  %v866_v6 = vadd.f32 %v1159_v5, %v1483_v8  ;;  %v857_v7 = vpop.f32.mrb[31].mxu1 }
 0x207   : > { %897 = vst [vmem:[%s1487_s12 + $0xe0] sm:$0xff] %v855_v4  ;;  %v858_v9 = vadd.f32 %v1483_v8, %v857_v7 }
 0x208   : > { %900 = vst [vmem:[%s1487_s12 + $0xf8] sm:$0xff] %v866_v6 }
 0x209   : > { %898 = vst [vmem:[%s1487_s12 + $0xe8] sm:$0xff] %v858_v9 }
 0x20a   : > { %1236 = shalt.err (!%p1233_p3)
}
 0x20b   : > { %s1237_s6 = scalar_lea.hbm %s1552_s17, 4096  ;;  %s1241_s9 = scalar_lea.hbm %s1608_s5, 8192 }
 0x20c   : > { %p1238_p4 = scmp.ne.s32.totalorder %s1552_s17, %s1237_s6  ;;  %p1242_p9 = scmp.lt.u32.totalorder %s1552_s17, %s1608_s5 }
 0x20d   : > { %p1243_p10 = scmp.lt.u32.totalorder %s1241_s9, %s1237_s6  ;;  %p1245_p12 = scmp.lt.u32.totalorder %s1237_s6, %s1552_s17 }
 0x20e   : > { %p1239_p7 = pnand %p1238_p4, %p1358_p5 }
 0x20f   : > { %p1244_p11 = por %p1243_p10, %p1242_p9 }
 0x210   : > { %p1240_p8 = pneg %p1239_p7 }
 0x211   : > { %p1246_p13 = por %p1245_p12, %p1244_p11 }
 0x213   : > { %p1247_p0 = pnand %p1246_p13, %p1240_p8 }
 0x215   : > { %1250 = shalt.err (!%p1247_p0)
}
 0x216   : > { %s1288_s12 = smov 128   ;;  %s1289_s13 = smov 8  }
 0x217   : > { %1160 = dma.vmem_to_hbm [thread:$0]  (%p1358_p5), %s1554_s14, 4096, %s1552_s17, %s1562_s22, %s1288_s12, %s1288_s12, %s1289_s13  }
 0x218 PF: > { %p1166_p1 = scmp.ge.s32.totalorder %s1285_s21, 2  ;;  %s930_s15 = sand.u32 1, %s1273_s18  }
 0x219   : > { %s931_s16 = scalar_lea.sflag [#allocation3], %s930_s15 }
 0x21a   : > { %p1163_p2 = pnand %p1166_p1, %p1362_p6 }
 0x21c   : > { %1268 = dma.done.wait (!%p1163_p2), %s931_s16, 4096  }
 0x21d   : > { %1270 = vsyncadd (!%p1163_p2), %s931_s16, 4294963200  ;;  %p15_p3 = scmp.ge.s32.totalorder %s1345_s24, 4   ;;  %s1611_s18 = smov %s1277_s19 }
 0x21e   : > { %s1612_s19 = smov %s1281_s20  ;;  %s1613_s20 = smov %s1356_s27 }
 0x21f   : > { %s1614_s21 = smov %s1345_s24  ;;  %17 = sbr.rel (!%p15_p3) target bundleno = 3 (0x3), region = 75 }
 0x226   :  { %936 = vsyncpa [#allocation3], 1 }
 0x227   :  { %938 = vsyncpa [#allocation3 + $0x1], 1 }

</bundles_post_ra>
